<compile_context>
chip_gen: v5e
topology: v5e:2x2
jax: 0.10.0
libtpu: 0.0.40
codegen_flags: <defaults>
</compile_context>

<pallas_src>
import jax
import jax.numpy as jnp
import numpy as np
from jax.experimental import pallas as pl
from jax.experimental.pallas import tpu as pltpu


def _round_up(n, m):
    return -(-n // m) * m


def _pick_batch_tile(B, S_pad, D_pad, itemsize, budget_bytes):
    """Largest legal batch tile whose double-buffered input slab fits the budget.

    Legal: divides B and is either B itself or a multiple of 8 (so the
    (bt, D_pad) output block stays sublane-aligned).  Prefers >= 2 grid steps
    (lights up v7x's second TensorCore) when such a tiling exists, and the
    fattest tile among those (fewer grid steps = less per-step overhead).
    """
    per_batch = S_pad * D_pad * itemsize
    cands = [bt for bt in range(8, B + 1, 8) if B % bt == 0]
    if B not in cands:
        cands.append(B)
    fitting = [bt for bt in cands if 2 * bt * per_batch <= budget_bytes]
    if not fitting:
        return min(cands)           # tiny-budget fallback; still legal
    multi = [bt for bt in fitting if B // bt >= 2]
    pool = multi if multi else fitting
    return max(pool)


def weighted_sum_kernel(x_ref, w_ref, o_ref):
    # x_ref: (bt, S, D_pad) input slab for this batch tile (lane-dense D)
    # w_ref: (1, D_pad)     score-projection weight row (zero-padded lanes)
    # o_ref: (bt, D_pad)    output slab (one dense, unmasked store per step)
    x = x_ref[...]                                     # (bt, S, D_pad)
    w = w_ref[...]                                     # (1, D_pad) -> broadcasts

    # scores[b, s] = sum_d x[b, s, d] * w[d]; zero-padded lanes contribute 0.
    # VPU multiply + lane reduce; avoids an N=1 MXU matmul round-trip.
    scores = jnp.sum(x * w, axis=-1, keepdims=True)    # (bt, S, 1)

    # Numerically stable softmax over the sequence axis.  The Linear bias is
    # algebraically dead here (softmax is shift-invariant), so it is omitted.
    m = jnp.max(scores, axis=1, keepdims=True)         # (bt, 1, 1)
    e = jnp.exp(scores - m)                            # (bt, S, 1)
    denom = jnp.sum(e, axis=1, keepdims=True)          # (bt, 1, 1)

    # Deferred normalization: unnormalized weighted sum over S, then a single
    # (bt, D_pad)-wide scale by 1/denom.  Padded lanes stay exactly zero.
    acc = jnp.sum(e * x, axis=1)                       # (bt, D_pad)
    inv = pl.reciprocal(denom[:, 0, :], approx=False)  # (bt, 1)
    o_ref[...] = (acc * inv).astype(o_ref.dtype)


def weighted_sum(x, w, bias=None, *, batch_tile=None):
    """x: (B, S, D) f32, w: (D, 1) Linear weight, bias ignored (shift-invariant).

    Returns (B, D).  `batch_tile` must divide B and be either B or a multiple
    of 8; by default it is chosen from the VMEM budget (>= 2 grid steps when
    B is large enough, so v7x can shard the "parallel" axis across both TCs).
    """
    del bias  # softmax(x @ w + b) == softmax(x @ w): bias never reaches the output
    B, S, D = x.shape
    itemsize = jnp.dtype(x.dtype).itemsize
    D_pad = _round_up(D, 128)
    S_pad = _round_up(S, 8)

    if batch_tile is None:
        bt = _pick_batch_tile(B, S_pad, D_pad, itemsize, budget_bytes=16 << 20)
    else:
        bt = batch_tile
        assert B % bt == 0, "batch_tile must divide the batch size"
        assert bt == B or bt % 8 == 0, (
            "batch_tile must be the full batch or a multiple of 8 "
            "(sublane alignment of the (bt, D_pad) output block)")

    # Lane-dense layout: pad the feature axis to a multiple of 128 lanes.
    # No-op (no extra HBM traffic) when D is already lane-aligned.
    if D_pad != D:
        x = jnp.pad(x, ((0, 0), (0, 0), (0, D_pad - D)))
    w_row = jnp.pad(w.reshape(1, D), ((0, 0), (0, D_pad - D)))

    out = pl.pallas_call(
        weighted_sum_kernel,
        out_shape=jax.ShapeDtypeStruct((B, D_pad), x.dtype),
        grid=(B // bt,),
        in_specs=[
            pl.BlockSpec((bt, S, D_pad), lambda i: (i, 0, 0)),
            pl.BlockSpec((1, D_pad), lambda i: (0, 0)),
        ],
        out_specs=pl.BlockSpec((bt, D_pad), lambda i: (i, 0)),
        compiler_params=pltpu.CompilerParams(
            dimension_semantics=("parallel",),
            # Explicit scoped-VMEM limit: v5e's default is only 16 MiB; the
            # tile budget above keeps total usage well under 32 MiB, which is
            # also safe on v7x (64 MiB physical per TC).
            vmem_limit_bytes=32 << 20,
        ),
    )(x, w_row)

    return out[:, :D] if D_pad != D else out


def weighted_sum_ref(x, w, bias):
    scores = jnp.einsum("bsd,do->bso", x, w) + bias[0, 0]      # (B, S, 1)
    weights = jax.nn.softmax(scores, axis=1)                   # (B, S, 1)
    res = jnp.einsum("bds,bso->bdo", jnp.swapaxes(x, 1, 2), weights)
    return res[..., 0]                                         # (B, D)


if __name__ == "__main__":
    seq_len, word_dim = 20, 50
    key = jax.random.PRNGKey(0)
    kx, kw, kb, kx2 = jax.random.split(key, 4)

    # nn.Linear(word_dim, 1)-style init: U(-1/sqrt(D), 1/sqrt(D))
    bound = 1.0 / np.sqrt(word_dim)
    w = jax.random.uniform(kw, (word_dim, 1), jnp.float32, -bound, bound)
    bias = jax.random.uniform(kb, (1, 1), jnp.float32, -bound, bound)

    # Spec shapes: batch=10 -> single fat grid step (bt = B).
    batch = 10
    x = jax.random.normal(kx, (batch, seq_len, word_dim), dtype=jnp.float32)
    out = jax.block_until_ready(weighted_sum(x, w, bias))
    expected = weighted_sum_ref(x, w, bias)
    np.testing.assert_allclose(np.asarray(out), np.asarray(expected),
                               rtol=1e-5, atol=1e-5)
    assert out.shape == (batch, word_dim)

    # Larger batch -> exercises the multi-step "parallel" grid path (bt=16).
    batch2 = 32
    x2 = jax.random.normal(kx2, (batch2, seq_len, word_dim), dtype=jnp.float32)
    out2 = jax.block_until_ready(weighted_sum(x2, w, bias))
    expected2 = weighted_sum_ref(x2, w, bias)
    np.testing.assert_allclose(np.asarray(out2), np.asarray(expected2),
                               rtol=1e-5, atol=1e-5)
    assert out2.shape == (batch2, word_dim)

    print("KERNEL_OK")
</pallas_src>

<mosaic_0001>
module attributes {stable_mosaic.version = 11 : i64} {
  func.func @weighted_sum_kernel(%arg0: i32, %arg1: memref<10x20x128xf32, #tpu.memory_space<vmem>>, %arg2: memref<1x128xf32, #tpu.memory_space<vmem>>, %arg3: memref<10x128xf32, #tpu.memory_space<vmem>>) attributes {dimension_semantics = [#tpu.dimension_semantics<parallel>], iteration_bounds = array<i64: 1>, scalar_prefetch = 0 : i64, scratch_operands = 0 : i64, tpu.core_type = #tpu.core_type<tc>, window_params = [{transform_indices = @transform_0, window_bounds = array<i64: 10, 20, 128>}, {pipeline_mode = #tpu.pipeline_mode<synchronous>, transform_indices = @transform_1, window_bounds = array<i64: 1, 128>}, {transform_indices = @transform_2, window_bounds = array<i64: 10, 128>}]} {
    %c0 = arith.constant 0 : index
    %c0_0 = arith.constant 0 : index
    %c0_1 = arith.constant 0 : index
    %0 = vector.load %arg1[%c0, %c0_0, %c0_1] : memref<10x20x128xf32, #tpu.memory_space<vmem>>, vector<10x20x128xf32>
    %c0_2 = arith.constant 0 : index
    %c0_3 = arith.constant 0 : index
    %1 = vector.load %arg2[%c0_2, %c0_3] : memref<1x128xf32, #tpu.memory_space<vmem>>, vector<1x128xf32>
    %2 = vector.shape_cast %1 : vector<1x128xf32> to vector<1x1x128xf32>
    %3 = vector.broadcast %2 : vector<1x1x128xf32> to vector<10x20x128xf32>
    %4 = arith.mulf %0, %3 : vector<10x20x128xf32>
    %cst = arith.constant dense<0.000000e+00> : vector<10x20xf32>
    %5 = vector.multi_reduction <add>, %4, %cst [2] : vector<10x20x128xf32> to vector<10x20xf32>
    %6 = vector.shape_cast %5 : vector<10x20xf32> to vector<10x20x1xf32>
    %cst_4 = arith.constant dense<0xFF800000> : vector<10x1xf32>
    %7 = vector.multi_reduction <maximumf>, %6, %cst_4 [1] : vector<10x20x1xf32> to vector<10x1xf32>
    %8 = vector.shape_cast %7 : vector<10x1xf32> to vector<10x1x1xf32>
    %9 = vector.broadcast %8 : vector<10x1x1xf32> to vector<10x20x1xf32>
    %10 = arith.subf %6, %9 : vector<10x20x1xf32>
    %11 = math.exp %10 : vector<10x20x1xf32>
    %cst_5 = arith.constant dense<0.000000e+00> : vector<10x1xf32>
    %12 = vector.multi_reduction <add>, %11, %cst_5 [1] : vector<10x20x1xf32> to vector<10x1xf32>
    %13 = vector.shape_cast %12 : vector<10x1xf32> to vector<10x1x1xf32>
    %14 = vector.broadcast %11 : vector<10x20x1xf32> to vector<10x20x128xf32>
    %15 = arith.mulf %14, %0 : vector<10x20x128xf32>
    %cst_6 = arith.constant dense<0.000000e+00> : vector<10x128xf32>
    %16 = vector.multi_reduction <add>, %15, %cst_6 [1] : vector<10x20x128xf32> to vector<10x128xf32>
    %17 = vector.shape_cast %13 : vector<10x1x1xf32> to vector<10x1xf32>
    %18 = tpu.reciprocal %17 : vector<10x1xf32> -> vector<10x1xf32>
    %19 = vector.broadcast %18 : vector<10x1xf32> to vector<10x128xf32>
    %20 = arith.mulf %16, %19 : vector<10x128xf32>
    %c0_7 = arith.constant 0 : index
    %c0_8 = arith.constant 0 : index
    %21 = vector.load %arg3[%c0_7, %c0_8] : memref<10x128xf32, #tpu.memory_space<vmem>>, vector<10x128xf32>
    tpu.vector_store %arg3[%c0_7, %c0_8], %20 {strides = array<i32>} : memref<10x128xf32, #tpu.memory_space<vmem>>, vector<10x128xf32>,
    return
  }
  func.func @transform_0(%arg0: i32) -> (i32, i32, i32) {
    %c0_i32 = arith.constant 0 : i32
    %c0_i32_0 = arith.constant 0 : i32
    %c0_i32_1 = arith.constant 0 : i32
    return %arg0, %c0_i32, %c0_i32_0 : i32, i32, i32
  }
  func.func @transform_1(%arg0: i32) -> (i32, i32) {
    %c0_i32 = arith.constant 0 : i32
    %c0_i32_0 = arith.constant 0 : i32
    %c0_i32_1 = arith.constant 0 : i32
    return %c0_i32, %c0_i32_0 : i32, i32
  }
  func.func @transform_2(%arg0: i32) -> (i32, i32) {
    %c0_i32 = arith.constant 0 : i32
    %c0_i32_0 = arith.constant 0 : i32
    return %arg0, %c0_i32 : i32, i32
  }
}

</mosaic_0001>

<bundles_post_ra>
// kernel: tpu_custom_call.1
= control target key start
LH: loop header
LB: loop body
LE: loop exit
PB: predicated region body
PF: predicated region fallthrough
CT: control target
= control target key end

     0   :  { %7 = vsyncpa [#allocation3], 0  ;;  %s1538_s0 = inlined_call_operand.hbm [shape: f32[10,20,128], index: 0, kind: input, shape index: {}]   ;;  %s1539_s1 = inlined_call_operand.hbm [shape: f32[1,128], index: 1, kind: input, shape index: {}]   ;;  %s1540_s2 = inlined_call_operand.hbm [shape: f32[10,128], index: 2, kind: output, shape index: {}]  }
   0x1   :  { %8 = vsyncpa [#allocation6], 0 }
   0x2   :  { %9 = vsyncpa [#allocation4], 0  ;;  %s14_s11 = sshll.u32 %s1538_s0, 4  ;;  %s930_s12 = smov [#allocation2]   ;;  %s15_s11 = int_to_ptr.hbm [resolvable:$true] %s14_s11 }
   0x3   :  { %s16_s13 = sshll.u32 %s930_s12, 4  ;;  %s28_s16 = sshll.u32 %s1539_s1, 4  ;;  %s17_s13 = int_to_ptr.vmem [resolvable:$true] %s16_s13  ;;  %s29_s16 = int_to_ptr.hbm [resolvable:$true] %s28_s16 }
   0x4   :  { %s931_s17 = smov 128   ;;  %s932_s18 = smov 8  }
   0x5   :  { %22 = dma.hbm_to_vmem [thread:$0]  %s15_s11, 3840, %s17_s13, [#allocation3], %s931_s17, %s931_s17, %s932_s18  }
   0x6   :  { %s933_s19 = smov [#allocation5]  }
   0x7   :  { %s30_s20 = sshll.u32 %s933_s19, 4  ;;  %s31_s20 = int_to_ptr.vmem [resolvable:$true] %s30_s20 }
   0x8   :  { %33 = dma.hbm_to_vmem [thread:$0]  %s29_s16, 16, %s31_s20, [#allocation6]  }
   0x9   :  { %924 = dma.done.wait [#allocation3], 3840  }
   0xa   :  { %925 = vsyncadd [#allocation3], 4294963456 }
   0xb   :  { %926 = dma.done.wait [#allocation6], 16  }
   0xc   :  { %927 = vsyncadd [#allocation6], 4294967280  ;;  %v959_v0 = vld [vmem:[#allocation2 + $0x18] sm:$0xff]  ;;  %v961_v1 = vld [vmem:[#allocation5] ss:$0 sm:$0xff]  ;;  %vm110_vm0 = vcmask 1043456  }
   0xd   :  { %v963_v2 = vld [vmem:[#allocation2] sm:$0xff]  ;;  %v965_v3 = vld [vmem:[#allocation2 + $0x10] sm:$0xf]  ;;  %v79_v4 = vmul.f32 %v961_v1, %v959_v0  ;;  %v973_v7 = vld [vmem:[#allocation2 + $0x28] sm:$0xf]  ;;  %s934_s0 = smov [#allocation7]  }
   0xe   :  { %v76_v5 = vmul.f32 %v961_v1, %v963_v2  ;;  %v78_v6 = vmul.f32 %v961_v1, %v965_v3  ;;  %v976_v9 = vld [vmem:[#allocation2 + $0x20] sm:$0xff]  ;;  %v978_v10 = vld [vmem:[#allocation2 + $0x8] sm:$0xff]  ;;  %v81_v11 = vmul.f32 %v961_v1, %v973_v7  ;;  %v989_v16 = vld [vmem:[#allocation2 + $0x38] sm:$0xff]  ;;  %s750_s1 = sshll.u32 %s934_s0, 4  ;;  %s752_s23 = sshll.u32 %s1540_s2, 4  ;;  %s751_s1 = int_to_ptr.vmem [resolvable:$true] %s750_s1  ;;  %s753_s23 = int_to_ptr.hbm [resolvable:$true] %s752_s23 }
   0xf   :  { %114 = vadd.xlane.f32.xlu1 %v79_v4  ;;  %v80_v12 = vmul.f32 %v961_v1, %v976_v9  ;;  %v77_v13 = vmul.f32 %v961_v1, %v978_v10  ;;  %v987_v15 = vld [vmem:[#allocation2 + $0x40] sm:$0xf]  ;;  %v991_v17 = vld [vmem:[#allocation2 + $0x30] sm:$0xff]  ;;  %v83_v19 = vmul.f32 %v961_v1, %v989_v16  ;;  %v1000_v22 = vld [vmem:[#allocation2 + $0x58] sm:$0xf] }
  0x10   :  { %106 = vadd.xlane.f32.xlu0 %v76_v5  ;;  %v111_v8 = vsel %vm110_vm0, %v78_v6, 0.0  ;;  %v118_v14 = vsel %vm110_vm0, %v81_v11, 0.0  ;;  %v84_v18 = vmul.f32 %v961_v1, %v987_v15  ;;  %v82_v20 = vmul.f32 %v961_v1, %v991_v17  ;;  %v1002_v23 = vld [vmem:[#allocation2 + $0x50] sm:$0xff]  ;;  %v1004_v24 = vld [vmem:[#allocation2 + $0x48] sm:$0xff]  ;;  %v1017_v31 = vld [vmem:[#allocation2 + $0x60] sm:$0xff] }
  0x11   :  { %112 = vadd.xlane.f32.xlu2 %v111_v8  ;;  %v87_v25 = vmul.f32 %v961_v1, %v1000_v22  ;;  %v86_v26 = vmul.f32 %v961_v1, %v1002_v23  ;;  %v85_v27 = vmul.f32 %v961_v1, %v1004_v24  ;;  %v1013_v29 = vld [vmem:[#allocation2 + $0x70] sm:$0xf]  ;;  %v1015_v30 = vld [vmem:[#allocation2 + $0x68] sm:$0xff]  ;;  %v88_v34 = vmul.f32 %v961_v1, %v1017_v31  ;;  %v1028_v37 = vld [vmem:[#allocation2 + $0x80] sm:$0xff] }
  0x12   :  { %v125_v21 = vsel %vm110_vm0, %v84_v18, 0.0  ;;  %v90_v32 = vmul.f32 %v961_v1, %v1013_v29  ;;  %v89_v33 = vmul.f32 %v961_v1, %v1015_v30  ;;  %v1026_v36 = vld [vmem:[#allocation2 + $0x88] sm:$0xf]  ;;  %v1030_v38 = vld [vmem:[#allocation2 + $0x78] sm:$0xff]  ;;  %v92_v40 = vmul.f32 %v961_v1, %v1028_v37  ;;  %v1039_v43 = vld [vmem:[#allocation2 + $0xa0] sm:$0xf] }
  0x13   :  { %v132_v28 = vsel %vm110_vm0, %v87_v25, 0.0  ;;  %v93_v39 = vmul.f32 %v961_v1, %v1026_v36  ;;  %v91_v41 = vmul.f32 %v961_v1, %v1030_v38  ;;  %v1041_v44 = vld [vmem:[#allocation2 + $0x98] sm:$0xff]  ;;  %v1043_v45 = vld [vmem:[#allocation2 + $0x90] sm:$0xff]  ;;  %v96_v46 = vmul.f32 %v961_v1, %v1039_v43  ;;  %v1054_v51 = vld [vmem:[#allocation2 + $0xa8] sm:$0xff] }
  0x14   :  { %v139_v35 = vsel %vm110_vm0, %v90_v32, 0.0  ;;  %v95_v47 = vmul.f32 %v961_v1, %v1041_v44  ;;  %v94_v48 = vmul.f32 %v961_v1, %v1043_v45  ;;  %v1052_v50 = vld [vmem:[#allocation2 + $0xb0] sm:$0xff]  ;;  %v1056_v52 = vld [vmem:[#allocation2 + $0xc0] sm:$0xff]  ;;  %v97_v54 = vmul.f32 %v961_v1, %v1054_v51  ;;  %v1064_v56 = vld [vmem:[#allocation2 + $0xd8] sm:$0xff] }
  0x15   :  { %v146_v42 = vsel %vm110_vm0, %v93_v39, 0.0  ;;  %v153_v49 = vsel %vm110_vm0, %v96_v46, 0.0  ;;  %v98_v53 = vmul.f32 %v961_v1, %v1052_v50  ;;  %v100_v55 = vmul.f32 %v961_v1, %v1056_v52  ;;  %v1066_v57 = vld [vmem:[#allocation2 + $0xc8] sm:$0xff]  ;;  %v1068_v58 = vld [vmem:[#allocation2 + $0xe0] sm:$0xff]  ;;  %v1076_v62 = vld [vmem:[#allocation2 + $0xd0] sm:$0xf] }
  0x16   :  { %v103_v59 = vmul.f32 %v961_v1, %v1064_v56  ;;  %v101_v60 = vmul.f32 %v961_v1, %v1066_v57  ;;  %v104_v61 = vmul.f32 %v961_v1, %v1068_v58  ;;  %v1078_v63 = vld [vmem:[#allocation2 + $0xb8] sm:$0xf]  ;;  %v1080_v4 = vld [vmem:[#allocation2 + $0xe8] sm:$0xf]  ;;  %v102_v5 = vmul.f32 %v961_v1, %v1076_v62 }
  0x17   :  { %116 = vadd.xlane.f32.xlu1 %v80_v12  ;;  %v99_v6 = vmul.f32 %v961_v1, %v1078_v63  ;;  %v105_v8 = vmul.f32 %v961_v1, %v1080_v4 }
  0x18   :  { %108 = vadd.xlane.f32.xlu0 %v77_v13  ;;  %v167_v11 = vsel %vm110_vm0, %v102_v5, 0.0 }
  0x19   :  { %119 = vadd.xlane.f32.xlu2 %v118_v14  ;;  %v160_v12 = vsel %vm110_vm0, %v99_v6, 0.0  ;;  %v174_v13 = vsel %vm110_vm0, %v105_v8, 0.0 }
  0x1f   :  { %123 = vadd.xlane.f32.xlu1 %v83_v19 }
  0x20   :  { %121 = vadd.xlane.f32.xlu0 %v82_v20 }
  0x21   :  { %126 = vadd.xlane.f32.xlu2 %v125_v21 }
  0x27   :  { %130 = vadd.xlane.f32.xlu1 %v86_v26 }
  0x28   :  { %128 = vadd.xlane.f32.xlu0 %v85_v27 }
  0x29   :  { %133 = vadd.xlane.f32.xlu2 %v132_v28 }
  0x2f   :  { %137 = vadd.xlane.f32.xlu1 %v89_v33 }
  0x30   :  { %135 = vadd.xlane.f32.xlu0 %v88_v34 }
  0x31   :  { %140 = vadd.xlane.f32.xlu2 %v139_v35 }
  0x37   :  { %144 = vadd.xlane.f32.xlu1 %v92_v40 }
  0x38   :  { %142 = vadd.xlane.f32.xlu0 %v91_v41 }
  0x39   :  { %147 = vadd.xlane.f32.xlu2 %v146_v42 }
  0x3f   :  { %151 = vadd.xlane.f32.xlu1 %v95_v47 }
  0x40   :  { %149 = vadd.xlane.f32.xlu0 %v94_v48 }
  0x41   :  { %154 = vadd.xlane.f32.xlu2 %v153_v49 }
  0x47   :  { %158 = vadd.xlane.f32.xlu1 %v98_v53 }
  0x48   :  { %156 = vadd.xlane.f32.xlu0 %v97_v54 }
  0x49   :  { %163 = vadd.xlane.f32.xlu2 %v100_v55 }
  0x4f   :  { %170 = vadd.xlane.f32.xlu1 %v103_v59 }
  0x50   :  { %165 = vadd.xlane.f32.xlu0 %v101_v60 }
  0x51   :  { %172 = vadd.xlane.f32.xlu2 %v104_v61 }
  0x57   :  { %168 = vadd.xlane.f32.xlu1 %v167_v11 }
  0x58   :  { %161 = vadd.xlane.f32.xlu0 %v160_v12 }
  0x59   :  { %175 = vadd.xlane.f32.xlu2 %v174_v13 }
  0x82   :  { %v115_v14 = vpop.xlane.xlu1 %114 }
  0x83   :  { %v107_v18 = vpop.xlane.xlu0 %106 }
  0x84   :  { %v113_v19 = vpop.xlane.xlu2 %112 }
  0x85   :  { %v178_v28 = vsel %vm110_vm0, %v113_v19, -inf }
  0x8a   :  { %v117_v20 = vpop.xlane.xlu1 %116 }
  0x8b   :  { %v109_v21 = vpop.xlane.xlu0 %108  ;;  %v186_v25 = vmax.f32 %v115_v14, %v117_v20 }
  0x8c   :  { %v177_v26 = vmax.f32 %v107_v18, %v109_v21  ;;  %v120_v27 = vpop.xlane.xlu2 %119 }
  0x8d   :  { %v187_v1 = vsel %vm110_vm0, %v120_v27, -inf }
  0x8e   :  { %v179_v32 = vmax.f32 %v177_v26, %v178_v28  ;;  %v188_v33 = vmax.f32 %v186_v25, %v187_v1 }
  0x90   :  { %v180_v34 = vrot.slane %v179_v32, 4  ;;  %v189_v35 = vrot.slane %v188_v33, 4 }
  0x92   :  { %v181_v39 = vmax.f32 %v179_v32, %v180_v34  ;;  %v190_v40 = vmax.f32 %v188_v33, %v189_v35  ;;  %v124_v41 = vpop.xlane.xlu1 %123 }
  0x93   :  { %v122_v42 = vpop.xlane.xlu0 %121 }
  0x94   :  { %v182_v46 = vrot.slane %v181_v39, 2  ;;  %v191_v47 = vrot.slane %v190_v40, 2  ;;  %v195_v48 = vmax.f32 %v122_v42, %v124_v41  ;;  %v127_v49 = vpop.xlane.xlu2 %126 }
  0x95   :  { %v196_v53 = vsel %vm110_vm0, %v127_v49, -inf }
  0x96   :  { %v183_v54 = vmax.f32 %v181_v39, %v182_v46  ;;  %v192_v55 = vmax.f32 %v190_v40, %v191_v47  ;;  %v197_v59 = vmax.f32 %v195_v48, %v196_v53 }
  0x98   :  { %v184_v60 = vrot.slane %v183_v54, 1  ;;  %v193_v61 = vrot.slane %v192_v55, 1  ;;  %v198_v5 = vrot.slane %v197_v59, 4 }
  0x9a   :  { %v185_v6 = vmax.f32 %v183_v54, %v184_v60  ;;  %v194_v8 = vmax.f32 %v192_v55, %v193_v61  ;;  %v199_v11 = vmax.f32 %v197_v59, %v198_v5  ;;  %v1094_v12 = vpop.xlane.xlu1 %130 }
  0x9b   :  { %v1096_v13 = vpop.xlane.xlu0 %128 }
  0x9c   :  { %v267_v25 = vsub.f32 %v107_v18, %v185_v6  ;;  %v268_v26 = vsub.f32 %v109_v21, %v185_v6  ;;  %v269_v28 = vsub.f32 %v113_v19, %v185_v6  ;;  %v270_v1 = vsub.f32 %v115_v14, %v194_v8  ;;  %v1098_v32 = vpop.xlane.xlu2 %133 }
  0x9d   :  { %v271_v33 = vsub.f32 %v117_v20, %v194_v8  ;;  %v272_v34 = vsub.f32 %v120_v27, %v194_v8  ;;  %v200_v35 = vrot.slane %v199_v11, 2  ;;  %v204_v39 = vmax.f32 %v1096_v13, %v1094_v12 }
  0x9e   :  { %v297_v40 = vmul.f32 1.442695, %v267_v25  ;;  %v299_v46 = vmul.f32 1.442695, %v268_v26  ;;  %v301_v47 = vmul.f32 1.442695, %v269_v28 }
  0x9f   :  { %v303_v48 = vmul.f32 1.442695, %v270_v1  ;;  %v201_v53 = vmax.f32 %v199_v11, %v200_v35  ;;  %v305_v54 = vmul.f32 1.442695, %v271_v33  ;;  %v205_v18 = vsel %vm110_vm0, %v1098_v32, -inf }
  0xa0   :  { %772 = vpow2.f32 %v297_v40  ;;  %v307_v14 = vmul.f32 1.442695, %v272_v34  ;;  %v206_v21 = vmax.f32 %v204_v39, %v205_v18 }
  0xa1   :  { %774 = vpow2.f32 %v299_v46  ;;  %v202_v19 = vrot.slane %v201_v53, 1 }
  0xa2   :  { %776 = vpow2.f32 %v301_v47  ;;  %v207_v27 = vrot.slane %v206_v21, 4  ;;  %v1104_v55 = vpop.xlane.xlu1 %137 }
  0xa3   :  { %778 = vpow2.f32 %v303_v48  ;;  %v203_v20 = vmax.f32 %v201_v53, %v202_v19  ;;  %v1106_v59 = vpop.xlane.xlu0 %135 }
  0xa4   :  { %780 = vpow2.f32 %v305_v54  ;;  %v213_v60 = vmax.f32 %v1106_v59, %v1104_v55  ;;  %v1110_v61 = vpop.xlane.xlu2 %140  ;;  %v208_v25 = vmax.f32 %v206_v21, %v207_v27 }
  0xa5   :  { %782 = vpow2.f32 %v307_v14  ;;  %v273_v5 = vsub.f32 %v122_v42, %v203_v20  ;;  %v274_v6 = vsub.f32 %v124_v41, %v203_v20  ;;  %v275_v8 = vsub.f32 %v127_v49, %v203_v20 }
  0xa6   :  { %v773_v11 = vpop.eup %772  ;;  %v214_v26 = vsel %vm110_vm0, %v1110_v61, -inf  ;;  %v209_v47 = vrot.slane %v208_v25, 2 }
  0xa7   :  { %v775_v28 = vpop.eup %774  ;;  %v447_v1 = vmul.f32 %v773_v11, %v963_v2  ;;  %v309_v33 = vmul.f32 1.442695, %v273_v5  ;;  %v311_v34 = vmul.f32 1.442695, %v274_v6  ;;  %v313_v35 = vmul.f32 1.442695, %v275_v8 }
  0xa8   :  { %v777_v39 = vpop.eup %776  ;;  %v357_v40 = vadd.f32 %v775_v28, %v773_v11  ;;  %v448_v46 = vmul.f32 %v775_v28, %v978_v10  ;;  %v215_v49 = vmax.f32 %v213_v60, %v214_v26  ;;  %v210_v11 = vmax.f32 %v208_v25, %v209_v47 }
  0xa9   :  { %v779_v48 = vpop.eup %778  ;;  %v358_v41 = vsel %vm110_vm0, %v777_v39, 0.0  ;;  %v449_v42 = vmul.f32 %v777_v39, %v965_v3  ;;  %784 = vpow2.f32 %v309_v33 }
  0xaa   :  { %v781_v53 = vpop.eup %780  ;;  %v359_v54 = vadd.f32 %v358_v41, %v357_v40  ;;  %v477_v18 = vadd.f32 %v448_v46, %v447_v1  ;;  %v450_v2 = vmul.f32 %v779_v48, %v959_v0  ;;  %786 = vpow2.f32 %v311_v34  ;;  %v1121_v20 = vpop.xlane.xlu1 %144 }
  0xab   :  { %v783_v14 = vpop.eup %782  ;;  %v478_v19 = vsel %vm110_vm0, %v449_v42, 0.0  ;;  %v366_v21 = vadd.f32 %v781_v53, %v779_v48  ;;  %v451_v10 = vmul.f32 %v781_v53, %v976_v9  ;;  %788 = vpow2.f32 %v313_v35  ;;  %v1123_v27 = vpop.xlane.xlu0 %142 }
  0xac   :  { %v360_v3 = vrot.slane %v359_v54, 4  ;;  %v479_v5 = vadd.f32 %v478_v19, %v477_v18  ;;  %v367_v60 = vsel %vm110_vm0, %v783_v14, 0.0  ;;  %v452_v6 = vmul.f32 %v783_v14, %v973_v7  ;;  %v1128_v9 = vpop.xlane.xlu2 %147 }
  0xad   :  { %v368_v8 = vadd.f32 %v367_v60, %v366_v21  ;;  %v486_v0 = vadd.f32 %v451_v10, %v450_v2  ;;  %v216_v33 = vrot.slane %v215_v49, 4  ;;  %v222_v40 = vmax.f32 %v1123_v27, %v1121_v20 }
  0xae   :  { %v361_v26 = vadd.f32 %v360_v3, %v359_v54  ;;  %v480_v28 = vrot.slane %v479_v5, 4  ;;  %v487_v1 = vsel %vm110_vm0, %v452_v6, 0.0  ;;  %v211_v42 = vrot.slane %v210_v11, 1 }
  0xaf   :  { %v785_v34 = vpop.eup %784  ;;  %v369_v35 = vrot.slane %v368_v8, 4  ;;  %v488_v39 = vadd.f32 %v487_v1, %v486_v0  ;;  %v217_v21 = vmax.f32 %v215_v49, %v216_v33 }
  0xb0   :  { %v787_v46 = vpop.eup %786  ;;  %v362_v48 = vrot.slane %v361_v26, 2  ;;  %v481_v41 = vadd.f32 %v480_v28, %v479_v5  ;;  %v453_v7 = vmul.f32 %v785_v34, %v991_v17  ;;  %v212_v1 = vmax.f32 %v210_v11, %v211_v42 }
  0xb1   :  { %v789_v25 = vpop.eup %788  ;;  %v370_v47 = vadd.f32 %v369_v35, %v368_v8  ;;  %v489_v53 = vrot.slane %v488_v39, 4  ;;  %v375_v54 = vadd.f32 %v787_v46, %v785_v34  ;;  %v454_v18 = vmul.f32 %v787_v46, %v989_v16 }
  0xb2   :  { %v363_v2 = vadd.f32 %v362_v48, %v361_v26  ;;  %v376_v14 = vsel %vm110_vm0, %v789_v25, 0.0  ;;  %v455_v19 = vmul.f32 %v789_v25, %v987_v15  ;;  %v1136_v5 = vpop.xlane.xlu1 %151  ;;  %v482_v8 = vrot.slane %v481_v41, 2 }
  0xb3   :  { %v371_v10 = vrot.slane %v370_v47, 2  ;;  %v490_v3 = vadd.f32 %v489_v53, %v488_v39  ;;  %v377_v60 = vadd.f32 %v376_v14, %v375_v54  ;;  %v495_v6 = vadd.f32 %v454_v18, %v453_v7  ;;  %v1138_v17 = vpop.xlane.xlu0 %149 }
  0xb4   :  { %v364_v0 = vrot.slane %v363_v2, 1  ;;  %v496_v28 = vsel %vm110_vm0, %v455_v19, 0.0  ;;  %v276_v15 = vsub.f32 %v1096_v13, %v212_v1  ;;  %v277_v49 = vsub.f32 %v1094_v12, %v212_v1 }
  0xb5   :  { %v372_v16 = vadd.f32 %v371_v10, %v370_v47  ;;  %v491_v26 = vrot.slane %v490_v3, 2  ;;  %v378_v34 = vrot.slane %v377_v60, 4  ;;  %v497_v35 = vadd.f32 %v496_v28, %v495_v6  ;;  %v1151_v47 = vpop.xlane.xlu2 %154 }
  0xb6   :  { %v1141_v46 = vadd.f32 %v364_v0, %v363_v2  ;;  %v278_v33 = vsub.f32 %v1098_v32, %v212_v1  ;;  %v223_v25 = vsel %vm110_vm0, %v1128_v9, -inf  ;;  %v1148_v53 = vadd.f32 %v482_v8, %v481_v41 }
  0xb7   :  { %v373_v39 = vrot.slane %v372_v16, 1  ;;  %v379_v48 = vadd.f32 %v378_v34, %v377_v60  ;;  %v498_v7 = vrot.slane %v497_v35, 4  ;;  %v315_v11 = vmul.f32 1.442695, %v276_v15 }
  0xb8   :  { %790 = vrcp.f32 %v1141_v46  ;;  %v317_v42 = vmul.f32 1.442695, %v277_v49  ;;  %v492_v54 = vadd.f32 %v491_v26, %v490_v3  ;;  %v319_v12 = vmul.f32 1.442695, %v278_v33 }
  0xb9   :  { %v380_v13 = vrot.slane %v379_v48, 2  ;;  %v499_v18 = vadd.f32 %v498_v7, %v497_v35  ;;  %792 = vpow2.f32 %v315_v11  ;;  %v218_v32 = vrot.slane %v217_v21, 2 }
  0xba   :  { %v224_v2 = vmax.f32 %v222_v40, %v223_v25  ;;  %v231_v14 = vmax.f32 %v1138_v17, %v1136_v5  ;;  %v1155_v19 = vadd.f32 %v373_v39, %v372_v16  ;;  %v232_v60 = vsel %vm110_vm0, %v1151_v47, -inf  ;;  %v1159_v8 = vpop.xlane.xlu1 %158 }
  0xbb   :  { %v381_v41 = vadd.f32 %v380_v13, %v379_v48  ;;  %v500_v10 = vrot.slane %v499_v18, 2  ;;  %794 = vpow2.f32 %v317_v42  ;;  %v219_v6 = vmax.f32 %v217_v21, %v218_v32  ;;  %v1161_v28 = vpop.xlane.xlu0 %156 }
  0xbc   :  { %v225_v0 = vrot.slane %v224_v2, 4  ;;  %v233_v3 = vmax.f32 %v231_v14, %v232_v60  ;;  %796 = vpow2.f32 %v319_v12  ;;  %v493_v15 = vrot.slane %v492_v54, 1 }
  0xbd   :  { %v382_v1 = vrot.slane %v381_v41, 1  ;;  %v501_v40 = vadd.f32 %v500_v10, %v499_v18  ;;  %v220_v16 = vrot.slane %v219_v6, 1  ;;  %798 = vrcp.f32 %v1155_v19 }
  0xbe   :  { %v1163_v26 = vpop.eup %790  ;;  %v226_v34 = vmax.f32 %v224_v2, %v225_v0  ;;  %v234_v35 = vrot.slane %v233_v3, 4  ;;  %v484_v7 = vrot.slane %v1148_v53, 1  ;;  %v1178_v0 = vadd.f32 %v493_v15, %v492_v54 }
  0xbf   :  { %v793_v49 = vpop.eup %792  ;;  %v221_v33 = vmax.f32 %v219_v6, %v220_v16  ;;  %v1169_v25 = vadd.f32 %v382_v1, %v381_v41  ;;  %v502_v11 = vrot.slane %v501_v40, 1  ;;  %v568_v13 = vmul.f32 %v1163_v26, %v1141_v46 }
  0xc0   :  { %v227_v39 = vrot.slane %v226_v34, 2  ;;  %v235_v48 = vmax.f32 %v233_v3, %v234_v35  ;;  %v456_v42 = vmul.f32 %v793_v49, %v1004_v24  ;;  %vm572_vm1 = vweird.f32 %v1141_v46 }
  0xc1   :  { %v795_v18 = vpop.eup %794  ;;  %v279_v12 = vsub.f32 %v1106_v59, %v221_v33  ;;  %v280_v32 = vsub.f32 %v1104_v55, %v221_v33  ;;  %v281_v2 = vsub.f32 %v1110_v61, %v221_v33  ;;  %v569_v15 = vsub.f32 1.0, %v568_v13 }
  0xc2   :  { %v228_v14 = vmax.f32 %v226_v34, %v227_v39  ;;  %v797_v10 = vpop.eup %796  ;;  %v384_v60 = vadd.f32 %v795_v18, %v793_v49  ;;  %v457_v6 = vmul.f32 %v795_v18, %v1002_v23  ;;  %v236_v41 = vrot.slane %v235_v48, 2  ;;  %v1184_v34 = vpop.xlane.xlu2 %163 }
  0xc3   :  { %v385_v24 = vsel %vm110_vm0, %v797_v10, 0.0  ;;  %v458_v3 = vmul.f32 %v797_v10, %v1000_v22  ;;  %v321_v1 = vmul.f32 1.442695, %v279_v12  ;;  %v323_v16 = vmul.f32 1.442695, %v280_v32  ;;  %v1182_v35 = vpop.eup %798  ;;  %v1187_v54 = vpop.xlane.xlu1 %170 }
  0xc4   :  { %v386_v59 = vadd.f32 %v385_v24, %v384_v60  ;;  %v504_v55 = vadd.f32 %v457_v6, %v456_v42  ;;  %v325_v21 = vmul.f32 1.442695, %v281_v2  ;;  %v229_v61 = vrot.slane %v228_v14, 1  ;;  %v1196_v60 = vpop.xlane.xlu0 %165 }
  0xc5   :  { %v505_v49 = vsel %vm110_vm0, %v458_v3, 0.0  ;;  %800 = vpow2.f32 %v321_v1  ;;  %v237_v23 = vmax.f32 %v235_v48, %v236_v41  ;;  %v1189_v18 = vadd.f32 %v502_v11, %v501_v40 }
  0xc6   :  { %v387_v33 = vrot.slane %v386_v59, 4  ;;  %v506_v39 = vadd.f32 %v505_v49, %v504_v55  ;;  %802 = vpow2.f32 %v323_v16  ;;  %v230_v22 = vmax.f32 %v228_v14, %v229_v61 }
  0xc7   :  { %804 = vpow2.f32 %v325_v21  ;;  %v238_v12 = vrot.slane %v237_v23, 1  ;;  %v1192_v42 = vadd.f32 %v484_v7, %v1148_v53  ;;  %v570_v40 = vmul.f32 %v1163_v26, %v569_v15 }
  0xc8   :  { %v388_v32 = vadd.f32 %v387_v33, %v386_v59  ;;  %v507_v2 = vrot.slane %v506_v39, 4  ;;  %v282_v10 = vsub.f32 %v1123_v27, %v230_v22  ;;  %v283_v48 = vsub.f32 %v1121_v20, %v230_v22 }
  0xc9   :  { %806 = vrcp.f32 %v1169_v25  ;;  %v284_v13 = vsub.f32 %v1128_v9, %v230_v22  ;;  %v239_v14 = vmax.f32 %v237_v23, %v238_v12  ;;  %vm573_vm2 = vweird.f32 %v1163_v26 }
  0xca   :  { %v389_v21 = vrot.slane %v388_v32, 2  ;;  %v508_v11 = vadd.f32 %v507_v2, %v506_v39  ;;  %v327_v6 = vmul.f32 1.442695, %v282_v10  ;;  %v329_v53 = vmul.f32 1.442695, %v283_v48  ;;  %vm1279_vm3 = vmor %vm572_vm1, %vm573_vm2 }
  0xcb   :  { %v801_v7 = vpop.eup %800  ;;  %v331_v41 = vmul.f32 1.442695, %v284_v13  ;;  %v285_v24 = vsub.f32 %v1138_v17, %v239_v14  ;;  %v286_v27 = vsub.f32 %v1136_v5, %v239_v14  ;;  %v287_v20 = vsub.f32 %v1151_v47, %v239_v14  ;;  %v1210_v47 = vpop.xlane.xlu2 %172 }
  0xcc   :  { %v803_v3 = vpop.eup %802  ;;  %v390_v1 = vadd.f32 %v389_v21, %v388_v32  ;;  %v509_v16 = vrot.slane %v508_v11, 2  ;;  %v459_v9 = vmul.f32 %v801_v7, %v1017_v31  ;;  %808 = vpow2.f32 %v327_v6  ;;  %v1214_v12 = vpop.xlane.xlu1 %168 }
  0xcd   :  { %v805_v59 = vpop.eup %804  ;;  %v393_v55 = vadd.f32 %v803_v3, %v801_v7  ;;  %v460_v61 = vmul.f32 %v803_v3, %v1015_v30  ;;  %810 = vpow2.f32 %v329_v53  ;;  %v333_v49 = vmul.f32 1.442695, %v285_v24 }
  0xce   :  { %v391_v23 = vrot.slane %v390_v1, 1  ;;  %v394_v15 = vsel %vm110_vm0, %v805_v59, 0.0  ;;  %v461_v17 = vmul.f32 %v805_v59, %v1013_v29  ;;  %v249_v5 = vmax.f32 %v1184_v34, %v1196_v60 }
  0xcf   :  { %v1212_v33 = vpop.eup %806  ;;  %v395_v31 = vadd.f32 %v394_v15, %v393_v55  ;;  %v513_v39 = vadd.f32 %v460_v61, %v459_v9  ;;  %812 = vpow2.f32 %v331_v41  ;;  %v335_v22 = vmul.f32 1.442695, %v286_v27 }
  0xd0   :  { %v1216_v30 = vadd.f32 %v391_v23, %v390_v1  ;;  %v1218_v32 = vadd.f32 %v509_v16, %v508_v11  ;;  %v514_v2 = vsel %vm110_vm0, %v461_v17, 0.0  ;;  %814 = vpow2.f32 %v333_v49  ;;  %v1229_v11 = vpop.xlane.xlu0 %161 }
  0xd1   :  { %v396_v29 = vrot.slane %v395_v31, 4  ;;  %v515_v10 = vadd.f32 %v514_v2, %v513_v39  ;;  %816 = vpow2.f32 %v335_v22  ;;  %v337_v48 = vmul.f32 1.442695, %v287_v20 }
  0xd2   :  { %v809_v13 = vpop.eup %808  ;;  %v1223_v14 = vmul.f32 %v1212_v33, %v1169_v25  ;;  %v258_v21 = vmax.f32 %v1187_v54, %v1210_v47  ;;  %v250_v6 = vsel %vm110_vm0, %v1214_v12, -inf  ;;  %v1232_v53 = vadd.f32 %v1163_v26, %v570_v40 }
  0xd3   :  { %v811_v7 = vpop.eup %810  ;;  %v397_v41 = vadd.f32 %v396_v29, %v395_v31  ;;  %v516_v24 = vrot.slane %v515_v10, 4  ;;  %v462_v27 = vmul.f32 %v809_v13, %v1030_v38  ;;  %818 = vpow2.f32 %v337_v48  ;;  %v1245_v48 = vpop.xlane.xlu2 %175 }
  0xd4   :  { %820 = vrcp.f32 %v1216_v30  ;;  %v402_v20 = vadd.f32 %v811_v7, %v809_v13  ;;  %v463_v3 = vmul.f32 %v811_v7, %v1028_v37  ;;  %v251_v1 = vmax.f32 %v249_v5, %v250_v6 }
  0xd5   :  { %v813_v16 = vpop.eup %812  ;;  %v511_v9 = vrot.slane %v1218_v32, 1  ;;  %v398_v59 = vrot.slane %v397_v41, 2  ;;  %v517_v55 = vadd.f32 %v516_v24, %v515_v10  ;;  %v241_v40 = vsel %vm110_vm0, %v1229_v11, -inf }
  0xd6   :  { %v815_v61 = vpop.eup %814  ;;  %v403_v49 = vsel %vm110_vm0, %v813_v16, 0.0  ;;  %v464_v38 = vmul.f32 %v813_v16, %v1026_v36  ;;  %v522_v23 = vadd.f32 %v463_v3, %v462_v27  ;;  %v252_v15 = vrot.slane %v251_v1, 4 }
  0xd7   :  { %v817_v17 = vpop.eup %816  ;;  %v399_v31 = vadd.f32 %v398_v59, %v397_v41  ;;  %v518_v39 = vrot.slane %v517_v55, 2  ;;  %v404_v37 = vadd.f32 %v403_v49, %v402_v20  ;;  %v465_v5 = vmul.f32 %v815_v61, %v1043_v45 }
  0xd8   :  { %v523_v22 = vsel %vm110_vm0, %v464_v38, 0.0  ;;  %v411_v2 = vadd.f32 %v817_v17, %v815_v61  ;;  %v466_v29 = vmul.f32 %v817_v17, %v1041_v44  ;;  %v253_v10 = vmax.f32 %v251_v1, %v252_v15 }
  0xd9   :  { %v819_v13 = vpop.eup %818  ;;  %v400_v6 = vrot.slane %v399_v31, 1  ;;  %v519_v7 = vadd.f32 %v518_v39, %v517_v55  ;;  %v405_v36 = vrot.slane %v404_v37, 4  ;;  %v1541_v24 = vmax.f32 %v1161_v28, %v1159_v8 }
  0xda   :  { %v1250_v27 = vpop.eup %820  ;;  %v524_v20 = vadd.f32 %v523_v22, %v522_v23  ;;  %v412_v45 = vsel %vm110_vm0, %v819_v13, 0.0  ;;  %v467_v3 = vmul.f32 %v819_v13, %v1039_v43  ;;  %v531_v16 = vadd.f32 %v466_v29, %v465_v5 }
  0xdb   :  { %v242_v41 = vmax.f32 %v1541_v24, %v241_v40  ;;  %v1255_v44 = vadd.f32 %v400_v6, %v399_v31  ;;  %v406_v1 = vadd.f32 %v405_v36, %v404_v37  ;;  %v259_v59 = vsel %vm110_vm0, %v1245_v48, -inf }
  0xdc   :  { %v525_v55 = vrot.slane %v524_v20, 4  ;;  %v413_v40 = vadd.f32 %v412_v45, %v411_v2  ;;  %v532_v61 = vsel %vm110_vm0, %v467_v3, 0.0  ;;  %v254_v49 = vrot.slane %v253_v10, 2 }
  0xdd   :  { %v1263_v38 = vmul.f32 %v1250_v27, %v1216_v30  ;;  %v520_v43 = vrot.slane %v519_v7, 1  ;;  %v407_v23 = vrot.slane %v406_v1, 2  ;;  %v533_v15 = vadd.f32 %v532_v61, %v531_v16 }
  0xde   :  { %v526_v17 = vadd.f32 %v525_v55, %v524_v20  ;;  %v414_v31 = vrot.slane %v413_v40, 4  ;;  %v255_v39 = vmax.f32 %v253_v10, %v254_v49  ;;  %v243_v37 = vrot.slane %v242_v41, 4 }
  0xdf   :  { %822 = vrcp.f32 %v1255_v44  ;;  %v408_v5 = vadd.f32 %v407_v23, %v406_v1  ;;  %v534_v22 = vrot.slane %v533_v15, 4  ;;  %v260_v2 = vmax.f32 %v258_v21, %v259_v59 }
  0xe0   :  { %v527_v29 = vrot.slane %v526_v17, 2  ;;  %v415_v13 = vadd.f32 %v414_v31, %v413_v40  ;;  %v256_v6 = vrot.slane %v255_v39, 1  ;;  %v244_v36 = vmax.f32 %v242_v41, %v243_v37 }
  0xe1   :  { %v1270_v24 = vadd.f32 %v511_v9, %v1218_v32  ;;  %v409_v45 = vrot.slane %v408_v5, 1  ;;  %v535_v20 = vadd.f32 %v534_v22, %v533_v15  ;;  %v261_v3 = vrot.slane %v260_v2, 4 }
  0xe2   :  { %v528_v10 = vadd.f32 %v527_v29, %v526_v17  ;;  %v416_v16 = vrot.slane %v415_v13, 2  ;;  %v257_v55 = vmax.f32 %v255_v39, %v256_v6  ;;  %v245_v61 = vrot.slane %v244_v36, 2 }
  0xe3   :  { %v611_v1 = vsub.f32 1.0, %v1263_v38  ;;  %v1273_v49 = vadd.f32 %v409_v45, %v408_v5  ;;  %v536_v23 = vrot.slane %v535_v20, 2  ;;  %v262_v21 = vmax.f32 %v260_v2, %v261_v3 }
  0xe4   :  { %v1283_v9 = vadd.f32 %v520_v43, %v519_v7  ;;  %v417_v41 = vadd.f32 %v416_v16, %v415_v13  ;;  %v291_v59 = vsub.f32 %v1184_v34, %v257_v55  ;;  %v575_v40 = vsel %vm1279_vm3, %v1163_v26, %v1232_v53 }
  0xe5   :  { %v1290_v15 = vpop.eup %822  ;;  %v529_v17 = vrot.slane %v528_v10, 1  ;;  %v292_v31 = vsub.f32 %v1196_v60, %v257_v55  ;;  %v293_v39 = vsub.f32 %v1214_v12, %v257_v55  ;;  %v576_v37 = vand.u32 2147483647, %v1141_v46 }
  0xe6   :  { %v418_v5 = vrot.slane %v417_v41, 1  ;;  %v345_v7 = vmul.f32 1.442695, %v291_v59  ;;  %v246_v43 = vmax.f32 %v244_v36, %v245_v61  ;;  %v263_v22 = vrot.slane %v262_v21, 2 }
  0xe7   :  { %824 = vrcp.f32 %v1273_v49  ;;  %v537_v34 = vadd.f32 %v536_v23, %v535_v20  ;;  %v347_v2 = vmul.f32 1.442695, %v292_v31  ;;  %v349_v29 = vmul.f32 1.442695, %v293_v39 }
  0xe8   :  { %v1296_v13 = vadd.f32 %v418_v5, %v417_v41  ;;  %826 = vpow2.f32 %v345_v7  ;;  %v247_v6 = vrot.slane %v246_v43, 1  ;;  %v264_v45 = vmax.f32 %v262_v21, %v263_v22 }
  0xe9   :  { %v1300_v60 = vmul.f32 %v1290_v15, %v1255_v44  ;;  %828 = vpow2.f32 %v347_v2  ;;  %v578_v12 = vand.u32 2147483648, %v1141_v46  ;;  %v582_v36 = vmul.f32 %v1182_v35, %v1155_v19 }
  0xea   :  { %830 = vrcp.f32 %v1296_v13  ;;  %v248_v20 = vmax.f32 %v246_v43, %v247_v6  ;;  %v265_v3 = vrot.slane %v264_v45, 1  ;;  %v1306_v16 = vadd.f32 %v529_v17, %v528_v10 }
  0xeb   :  { %vm1308_vm4 = vcmp.eq.f32.partialorder %v576_v37, 8.507059e+37  ;;  %832 = vpow2.f32 %v349_v29  ;;  %v538_v61 = vrot.slane %v537_v34, 1  ;;  %v583_v23 = vsub.f32 1.0, %v582_v36 }
  0xec   :  { %vm586_vm5 = vweird.f32 %v1155_v19  ;;  %v288_v46 = vsub.f32 %v1161_v28, %v248_v20  ;;  %v289_v21 = vsub.f32 %v1159_v8, %v248_v20  ;;  %v290_v41 = vsub.f32 %v1229_v11, %v248_v20 }
  0xed   :  { %v266_v59 = vmax.f32 %v264_v45, %v265_v3  ;;  %v1316_v31 = vpop.eup %824  ;;  %v579_v10 = vor.u32 1.1754944e-38, %v578_v12  ;;  %v584_v17 = vmul.f32 %v1182_v35, %v583_v23  ;;  %vm587_vm6 = vweird.f32 %v1182_v35 }
  0xee   :  { %v590_v39 = vand.u32 2147483647, %v1155_v19  ;;  %v827_v37 = vpop.eup %826  ;;  %v339_v5 = vmul.f32 1.442695, %v288_v46  ;;  %v341_v7 = vmul.f32 1.442695, %v289_v21  ;;  %v1334_v21 = vadd.f32 %v538_v61, %v537_v34  ;;  %vm1349_vm7 = vmor %vm586_vm5, %vm587_vm6 }
  0xef   :  { %v343_v43 = vmul.f32 1.442695, %v290_v41  ;;  %v294_v28 = vsub.f32 %v1187_v54, %v266_v59  ;;  %v829_v22 = vpop.eup %828  ;;  %v471_v8 = vmul.f32 %v827_v37, %v1056_v52  ;;  %v295_v11 = vsub.f32 %v1210_v47, %v266_v59 }
  0xf0   :  { %v296_v2 = vsub.f32 %v1245_v48, %v266_v59  ;;  %v1326_v29 = vadd.f32 %v1182_v35, %v584_v17  ;;  %v1328_v6 = vpop.eup %830  ;;  %v429_v45 = vadd.f32 %v829_v22, %v827_v37  ;;  %v472_v12 = vmul.f32 %v829_v22, %v1066_v57 }
  0xf1   :  { %834 = vpow2.f32 %v339_v5  ;;  %v351_v36 = vmul.f32 1.442695, %v294_v28  ;;  %v833_v20 = vpop.eup %832  ;;  %v353_v54 = vmul.f32 1.442695, %v295_v11  ;;  %v592_v52 = vand.u32 2147483648, %v1155_v19 }
  0xf2   :  { %836 = vpow2.f32 %v341_v7  ;;  %v355_v3 = vmul.f32 1.442695, %v296_v2  ;;  %v430_v47 = vsel %vm110_vm0, %v833_v20, 0.0  ;;  %v473_v48 = vmul.f32 %v833_v20, %v1076_v62 }
  0xf3   :  { %v549_v23 = vadd.f32 %v472_v12, %v471_v8  ;;  %838 = vpow2.f32 %v343_v43  ;;  %v431_v46 = vadd.f32 %v430_v47, %v429_v45  ;;  %v1343_v57 = vsel %vm1308_vm4, %v579_v10, %v575_v40 }
  0xf4   :  { %840 = vpow2.f32 %v351_v36  ;;  %v550_v34 = vsel %vm110_vm0, %v473_v48, 0.0  ;;  %v589_v26 = vsel %vm1349_vm7, %v1182_v35, %v1326_v29  ;;  %v597_v53 = vsub.f32 1.0, %v1223_v14 }
  0xf5   :  { %842 = vpow2.f32 %v353_v54  ;;  %v432_v32 = vrot.slane %v431_v46, 4  ;;  %v551_v40 = vadd.f32 %v550_v34, %v549_v23  ;;  %vm1359_vm8 = vcmp.eq.f32.partialorder %v590_v39, 8.507059e+37 }
  0xf6   :  { %844 = vpow2.f32 %v355_v3  ;;  %v593_v61 = vor.u32 1.1754944e-38, %v592_v52  ;;  %v598_v41 = vmul.f32 %v1212_v33, %v597_v53  ;;  %vm600_vm9 = vweird.f32 %v1169_v25 }
  0xf7   :  { %v835_v19 = vpop.eup %834  ;;  %vm601_vm10 = vweird.f32 %v1212_v33  ;;  %v433_v10 = vadd.f32 %v432_v32, %v431_v46  ;;  %v552_v35 = vrot.slane %v551_v40, 4  ;;  %v604_v17 = vand.u32 2147483647, %v1169_v25 }
  0xf8   :  { %v837_v59 = vpop.eup %836  ;;  %v468_v14 = vmul.f32 %v835_v19, %v1054_v51  ;;  %v606_v7 = vand.u32 2147483648, %v1169_v25  ;;  %v612_v43 = vmul.f32 %v1250_v27, %v611_v1  ;;  %v1383_v32 = vsel %vm1359_vm8, %v593_v61, %v589_v26  ;;  %vm1389_vm11 = vmor %vm600_vm9, %vm601_vm10 }
  0xf9   :  { %v839_v37 = vpop.eup %838  ;;  %v420_v39 = vadd.f32 %v837_v59, %v835_v19  ;;  %v469_v5 = vmul.f32 %v837_v59, %v1052_v50  ;;  %v434_v22 = vrot.slane %v433_v10, 2  ;;  %v553_v8 = vadd.f32 %v552_v35, %v551_v40 }
  0xfa   :  { %v841_v28 = vpop.eup %840  ;;  %v421_v11 = vsel %vm110_vm0, %v839_v37, 0.0  ;;  %v470_v2 = vmul.f32 %v839_v37, %v1078_v63  ;;  %v599_v50 = vadd.f32 %v1212_v33, %v598_v41  ;;  %vm1397_vm12 = vcmp.eq.f32.partialorder %v604_v17, 8.507059e+37 }
  0xfb   :  { %v843_v51 = vpop.eup %842  ;;  %v422_v29 = vadd.f32 %v421_v11, %v420_v39  ;;  %v540_v45 = vadd.f32 %v469_v5, %v468_v14  ;;  %v474_v12 = vmul.f32 %v841_v28, %v1064_v56  ;;  %v435_v20 = vadd.f32 %v434_v22, %v433_v10 }
  0xfc   :  { %v845_v36 = vpop.eup %844  ;;  %v554_v54 = vrot.slane %v553_v8, 2  ;;  %v541_v38 = vsel %vm110_vm0, %v470_v2, 0.0  ;;  %v438_v1 = vadd.f32 %v843_v51, %v841_v28  ;;  %v475_v48 = vmul.f32 %v843_v51, %v1068_v58 }
  0xfd   :  { %v423_v3 = vrot.slane %v422_v29, 4  ;;  %v542_v52 = vadd.f32 %v541_v38, %v540_v45  ;;  %v439_v47 = vsel %vm110_vm0, %v845_v36, 0.0  ;;  %v436_v63 = vrot.slane %v435_v20, 1 }
  0xfe   :  { %v440_v23 = vadd.f32 %v439_v47, %v438_v1  ;;  %v476_v46 = vmul.f32 %v845_v36, %v1080_v4  ;;  %v555_v62 = vadd.f32 %v554_v54, %v553_v8  ;;  %v558_v53 = vadd.f32 %v475_v48, %v474_v12 }
  0xff   :  { %v424_v56 = vadd.f32 %v423_v3, %v422_v29  ;;  %v543_v34 = vrot.slane %v542_v52, 4  ;;  %v603_v4 = vsel %vm1389_vm11, %v1212_v33, %v599_v50  ;;  %v607_v59 = vor.u32 1.1754944e-38, %v606_v7 }
 0x100   :  { %v441_v58 = vrot.slane %v440_v23, 4  ;;  %v559_v19 = vsel %vm110_vm0, %v476_v46, 0.0  ;;  %v1401_v25 = vadd.f32 %v436_v63, %v435_v20  ;;  %v556_v35 = vrot.slane %v555_v62, 1 }
 0x101   :  { %v425_v26 = vrot.slane %v424_v56, 2  ;;  %v544_v55 = vadd.f32 %v543_v34, %v542_v52  ;;  %v560_v61 = vadd.f32 %v559_v19, %v558_v53  ;;  %v613_v14 = vadd.f32 %v1250_v27, %v612_v43 }
 0x102   :  { %v442_v10 = vadd.f32 %v441_v58, %v440_v23  ;;  %vm614_vm13 = vweird.f32 %v1216_v30  ;;  %vm615_vm14 = vweird.f32 %v1250_v27  ;;  %v618_v17 = vand.u32 2147483647, %v1216_v30 }
 0x103   :  { %v426_v37 = vadd.f32 %v425_v26, %v424_v56  ;;  %v545_v39 = vrot.slane %v544_v55, 2  ;;  %v561_v5 = vrot.slane %v560_v61, 4  ;;  %v620_v28 = vand.u32 2147483648, %v1216_v30  ;;  %vm1408_vm15 = vmor %vm614_vm13, %vm615_vm14 }
 0x104   :  { %v443_v33 = vrot.slane %v442_v10, 2  ;;  %v625_v43 = vsub.f32 1.0, %v1300_v60  ;;  %846 = vrcp.f32 %v1401_v25  ;;  %v1416_v51 = vsel %vm1397_vm12, %v607_v59, %v603_v4 }
 0x105   :  { %v427_v22 = vrot.slane %v426_v37, 1  ;;  %v562_v7 = vadd.f32 %v561_v5, %v560_v61  ;;  %v546_v8 = vadd.f32 %v545_v39, %v544_v55  ;;  %v617_v30 = vsel %vm1408_vm15, %v1250_v27, %v613_v14 }
 0x106   :  { %v444_v2 = vadd.f32 %v443_v33, %v442_v10  ;;  %v626_v50 = vmul.f32 %v1290_v15, %v625_v43  ;;  %vm619_vm0 = vcmp.eq.f32.partialorder %v618_v17, 8.507059e+37  ;;  %v621_v60 = vor.u32 1.1754944e-38, %v620_v28 }
 0x107   :  { %v1421_v29 = vadd.f32 %v427_v22, %v426_v37  ;;  %v563_v45 = vrot.slane %v562_v7, 2  ;;  %v547_v12 = vrot.slane %v546_v8, 1  ;;  %vm629_vm1 = vweird.f32 %v1290_v15 }
 0x108   :  { %v445_v36 = vrot.slane %v444_v2, 1  ;;  %v627_v54 = vadd.f32 %v1290_v15, %v626_v50  ;;  %vm628_vm2 = vweird.f32 %v1255_v44  ;;  %v632_v27 = vand.u32 2147483647, %v1255_v44 }
 0x109   :  { %848 = vrcp.f32 %v1421_v29  ;;  %v564_v20 = vadd.f32 %v563_v45, %v562_v7  ;;  %v634_v1 = vand.u32 2147483648, %v1255_v44  ;;  %v638_v3 = vmul.f32 %v1316_v31, %v1273_v49  ;;  %vm1440_vm3 = vmor %vm628_vm2, %vm629_vm1 }
 0x10a   :  { %v1428_v38 = vadd.f32 %v445_v36, %v444_v2  ;;  %v1434_v52 = vadd.f32 %v547_v12, %v546_v8  ;;  %v1436_v47 = vadd.f32 %v556_v35, %v555_v62  ;;  %v1438_v63 = vsel %vm619_vm0, %v621_v60, %v617_v30  ;;  %v1444_v46 = vpop.eup %846 }
 0x10b   :  { %v565_v48 = vrot.slane %v564_v20, 1  ;;  %v631_v44 = vsel %vm1440_vm3, %v1290_v15, %v627_v54  ;;  %v639_v56 = vsub.f32 1.0, %v638_v3  ;;  %vm642_vm4 = vweird.f32 %v1273_v49 }
 0x10c   :  { %850 = vrcp.f32 %v1428_v38  ;;  %v635_v62 = vor.u32 1.1754944e-38, %v634_v1  ;;  %v646_v34 = vand.u32 2147483647, %v1273_v49  ;;  %v648_v53 = vand.u32 2147483648, %v1273_v49 }
 0x10d   :  { %v652_v40 = vmul.f32 %v1328_v6, %v1296_v13  ;;  %v1455_v58 = vadd.f32 %v565_v48, %v564_v20  ;;  %vm633_vm5 = vcmp.eq.f32.partialorder %v632_v27, 8.507059e+37  ;;  %v640_v19 = vmul.f32 %v1316_v31, %v639_v56 }
 0x10e   :  { %vm643_vm6 = vweird.f32 %v1316_v31  ;;  %v636_v15 = vsel %vm633_vm5, %v635_v62, %v631_v44  ;;  %vm656_vm7 = vweird.f32 %v1296_v13  ;;  %v660_v26 = vand.u32 2147483647, %v1296_v13 }
 0x10f   :  { %v849_v4 = vpop.eup %848  ;;  %v653_v41 = vsub.f32 1.0, %v652_v40  ;;  %v641_v55 = vadd.f32 %v1316_v31, %v640_v19  ;;  %vm657_vm8 = vweird.f32 %v1328_v6  ;;  %v662_v61 = vand.u32 2147483648, %v1296_v13  ;;  %vm644_vm9 = vmor %vm642_vm4, %vm643_vm6 }
 0x110   :  { %v666_v59 = vmul.f32 %v849_v4, %v1421_v29  ;;  %vm647_vm10 = vcmp.eq.f32.partialorder %v646_v34, 8.507059e+37  ;;  %v649_v10 = vor.u32 1.1754944e-38, %v648_v53  ;;  %v674_v14 = vand.u32 2147483647, %v1421_v29  ;;  %vm658_vm14 = vmor %vm656_vm7, %vm657_vm8 }
 0x111   :  { %v654_v35 = vmul.f32 %v1328_v6, %v653_v41  ;;  %v645_v39 = vsel %vm644_vm9, %v1316_v31, %v641_v55  ;;  %vm670_vm11 = vweird.f32 %v1421_v29  ;;  %v676_v33 = vand.u32 2147483648, %v1421_v29 }
 0x112   :  { %v851_v37 = vpop.eup %850  ;;  %v667_v5 = vsub.f32 1.0, %v666_v59  ;;  %vm1473_vm12 = vcmp.eq.f32.partialorder %v660_v26, 8.507059e+37  ;;  %vm671_vm13 = vweird.f32 %v849_v4  ;;  %v680_v49 = vmul.f32 %v1444_v46, %v1401_v25 }
 0x113   :  { %v655_v17 = vadd.f32 %v1328_v6, %v654_v35  ;;  %v650_v22 = vsel %vm647_vm10, %v649_v10, %v645_v39  ;;  %v663_v31 = vor.u32 1.1754944e-38, %v662_v61  ;;  %vm1483_vm15 = vcmp.eq.f32.partialorder %v674_v14, 8.507059e+37  ;;  %vm1497_vm1 = vmor %vm670_vm11, %vm671_vm13 }
 0x114   :  { %v668_v7 = vmul.f32 %v849_v4, %v667_v5  ;;  %v677_v43 = vor.u32 1.1754944e-38, %v676_v33  ;;  %v681_v2 = vsub.f32 1.0, %v680_v49  ;;  %v688_v30 = vand.u32 2147483647, %v1401_v25 }
 0x115   :  { %v659_v11 = vsel %vm658_vm14, %v1328_v6, %v655_v17  ;;  %vm684_vm0 = vweird.f32 %v1401_v25  ;;  %v690_v12 = vand.u32 2147483648, %v1401_v25  ;;  %v694_v13 = vmul.f32 %v851_v37, %v1428_v38 }
 0x116   :  { %v669_v45 = vadd.f32 %v849_v4, %v668_v7  ;;  %v664_v50 = vsel %vm1473_vm12, %v663_v31, %v659_v11  ;;  %v682_v6 = vmul.f32 %v1444_v46, %v681_v2  ;;  %vm685_vm2 = vweird.f32 %v1444_v46 }
 0x117   :  { %vm698_vm3 = vweird.f32 %v1428_v38  ;;  %v695_v20 = vsub.f32 1.0, %v694_v13  ;;  %v702_v54 = vand.u32 2147483647, %v1428_v38  ;;  %v704_v27 = vand.u32 2147483648, %v1428_v38  ;;  %vm686_vm5 = vmor %vm684_vm0, %vm685_vm2 }
 0x118   :  { %v673_v60 = vsel %vm1497_vm1, %v849_v4, %v669_v45  ;;  %v683_v29 = vadd.f32 %v1444_v46, %v682_v6  ;;  %vm689_vm4 = vcmp.eq.f32.partialorder %v688_v30, 8.507059e+37  ;;  %v707_v1 = vmul.f32 %v1343_v57, %v1192_v42 }
 0x119   :  { %v708_v3 = vmul.f32 %v1383_v32, %v1178_v0  ;;  %v691_v48 = vor.u32 1.1754944e-38, %v690_v12  ;;  %v696_v23 = vmul.f32 %v851_v37, %v695_v20  ;;  %vm699_vm6 = vweird.f32 %v851_v37 }
 0x11a   :  { %v709_v44 = vmul.f32 %v1416_v51, %v1189_v18  ;;  %v678_v56 = vsel %vm1483_vm15, %v677_v43, %v673_v60  ;;  %v687_v62 = vsel %vm686_vm5, %v1444_v46, %v683_v29  ;;  %vm703_vm7 = vcmp.eq.f32.partialorder %v702_v54, 8.507059e+37  ;;  %vm700_vm8 = vmor %vm698_vm3, %vm699_vm6 }
 0x11b   :  { %v705_v34 = vor.u32 1.1754944e-38, %v704_v27  ;;  %v692_v42 = vsel %vm689_vm4, %v691_v48, %v687_v62  ;;  %v697_v57 = vadd.f32 %v851_v37, %v696_v23  ;;  %v710_v0 = vmul.f32 %v1438_v63, %v1270_v24 }
 0x11c   :  { %v711_v32 = vmul.f32 %v636_v15, %v1283_v9  ;;  %v712_v25 = vmul.f32 %v650_v22, %v1306_v16  ;;  %vm727_vm9 = vcmask 1041409   ;;  %vm729_vm10 = vcmask 1042434  }
 0x11d   :  { %vm731_vm11 = vcmask 1043459   ;;  %v701_v18 = vsel %vm700_vm8, %v851_v37, %v697_v57  ;;  %v715_v51 = vmul.f32 %v692_v42, %v1436_v47  ;;  %v728_v46 = vsel %vm727_vm9, %v708_v3, %v707_v1 }
 0x11e   :  { %vm733_vm12 = vcmask 1044484   ;;  %v706_v53 = vsel %vm703_vm7, %v705_v34, %v701_v18  ;;  %v713_v40 = vmul.f32 %v664_v50, %v1334_v21  ;;  %v730_v24 = vsel %vm729_vm10, %v709_v44, %v728_v46 }
 0x11f   :  { %vm735_vm13 = vcmask 1045509   ;;  %v714_v9 = vmul.f32 %v678_v56, %v1434_v52  ;;  %v716_v38 = vmul.f32 %v706_v53, %v1455_v58  ;;  %v732_v63 = vsel %vm731_vm11, %v710_v0, %v730_v24 }
 0x120   :  { %vm737_vm14 = vcmask 1046534   ;;  %v734_v16 = vsel %vm733_vm12, %v711_v32, %v732_v63  ;;  %vm739_vm15 = vcmask 1047559  }
 0x121   :  { %v736_v47 = vsel %vm735_vm13, %v712_v25, %v734_v16  ;;  %v741_v19 = vsel %vm727_vm9, %v716_v38, %v715_v51 }
 0x122   :  { %v738_v21 = vsel %vm737_vm14, %v713_v40, %v736_v47  ;;  %745 = vst [vmem:[#allocation7 + $0x8] sm:$0x3] %v741_v19 }
 0x123   :  { %v740_v52 = vsel %vm739_vm15, %v714_v9, %v738_v21 }
 0x124   :  { %744 = vst [vmem:[#allocation7] sm:$0xff] %v740_v52 }
 0x125   :  { %758 = dma.vmem_to_hbm [thread:$0]  %s751_s1, 256, %s753_s23, [#allocation4], %s931_s17, %s931_s17, %s932_s18  }
 0x126   :  { %928 = dma.done.wait [#allocation4], 256  }
 0x127   :  { %929 = vsyncadd [#allocation4], 4294967040 }
 0x128   :  { %763 = vsyncpa [#allocation3], 1 }
 0x129   :  { %764 = vsyncpa [#allocation6], 1 }
 0x12a   :  { %765 = vsyncpa [#allocation4], 1 }

</bundles_post_ra>
